<compile_context>
chip_gen: v7x
topology: tpu7x:2x2x1
jax: 0.10.0
libtpu: 0.0.40
codegen_flags: <defaults>
</compile_context>

<pallas_src>
import functools

import jax
import jax.numpy as jnp
from jax import lax
from jax.experimental import pallas as pl
from jax.experimental.pallas import tpu as pltpu


def _round_up(x: int, m: int) -> int:
    return ((x + m - 1) // m) * m


# -----------------------------------------------------------------------------
# Kernel 1: compose the dense weight W from Householder vectors v and diag d.
# -----------------------------------------------------------------------------
def _compose_w_kernel(v_ref, d_ref, w_ref, *, in_features, out_features, order):
    # v_ref: (order, F)           Householder vectors, zero-padded to F lanes.
    # d_ref: (1, out_p)           zero-padded row    if out_features <= in_features
    #        (in_features, 1)     column             otherwise
    # w_ref: (in_features, out_p) lane-dense padded weight.
    v = v_ref[...]
    # rsqrt-and-multiply (EUP slot) instead of sqrt + divide.
    t = v * lax.rsqrt(jnp.sum(v * v, axis=1, keepdims=True))        # (order, F)

    feat = v_ref.shape[1]
    u = jnp.eye(feat, dtype=jnp.float32)
    # u <- u @ H_i == u - 2 (u t_i) t_i^T, implemented as a lane reduce plus a
    # rank-1 broadcast update on the VPU/XLU (no degenerate width-1 MXU ops).
    # `order` is small so the static unroll is cheap, and the whole composition
    # runs exactly once per call (amortized over the batch-tiled GEMM below).
    # TODO(synk): for very large max_feature the resident (F, F) `u` can exceed
    # v7x's 64 MiB VMEM; switch to compact-WY / apply-reflections-to-x there.
    for i in range(order):
        ti = t[i:i + 1, :]                                           # (1, F)
        u_ti = jnp.sum(u * ti, axis=1, keepdims=True)                # (F, 1)
        u = u - 2.0 * u_ti * ti

    d = d_ref[...]
    out_p = w_ref.shape[1]
    if out_features <= in_features:
        # W = u[:, :out] * d ; zero padding of d kills the columns >= out.
        w_ref[...] = u[:in_features, :out_p] * d
    else:
        # W = diag(d) @ u[:in, :] ; here out_p == F and the padded block of u
        # is zero off-diagonal for rows < in, so the extra columns are zero.
        w_ref[...] = u[:in_features, :] * d


# -----------------------------------------------------------------------------
# Kernel 2: batch-tiled GEMM (+ bias).
# -----------------------------------------------------------------------------
def _matmul_bias_kernel(*refs, use_bias, matmul_dtype):
    if use_bias:
        x_ref, w_ref, b_ref, o_ref = refs
    else:
        x_ref, w_ref, o_ref = refs
    x = x_ref[...].astype(matmul_dtype)
    w = w_ref[...].astype(matmul_dtype)
    y = jnp.dot(x, w, preferred_element_type=jnp.float32)
    if use_bias:
        y = y + b_ref[...]                         # (1, out_p) broadcasts
    o_ref[...] = y.astype(o_ref.dtype)


# -----------------------------------------------------------------------------
# Wrapper
# -----------------------------------------------------------------------------
def orthogonal_bayesian_dense(x, v, d, bias=None, *, in_features, out_features,
                              matmul_dtype=jnp.bfloat16, batch_tile=512):
    """x: (batch, in_features); v: (order, max_feature); d: (min_feature,);
    bias: (out_features,) or None.  Returns (batch, out_features) float32."""
    batch = x.shape[0]
    order, maxf = v.shape
    assert maxf == max(in_features, out_features)
    minf = min(in_features, out_features)

    x = x.astype(jnp.float32)
    v = v.astype(jnp.float32)
    d = d.astype(jnp.float32)

    feat_p = _round_up(maxf, 128)             # padded Householder feature dim
    out_p = _round_up(out_features, 128)      # lane-dense output width

    # ---- Phase 1: compose W (in_features, out_p) once per call. -------------
    v_p = jnp.pad(v, ((0, 0), (0, feat_p - maxf)))
    if out_features <= in_features:
        d_op = jnp.pad(d.reshape(1, minf), ((0, 0), (0, out_p - minf)))
    else:
        d_op = d.reshape(minf, 1)

    compose = functools.partial(_compose_w_kernel, in_features=in_features,
                                out_features=out_features, order=order)
    w = pl.pallas_call(
        compose,
        out_shape=jax.ShapeDtypeStruct((in_features, out_p), jnp.float32),
        in_specs=[pl.BlockSpec(memory_space=pltpu.MemorySpace.VMEM)] * 2,
        out_specs=pl.BlockSpec(memory_space=pltpu.MemorySpace.VMEM),
        compiler_params=pltpu.CompilerParams(vmem_limit_bytes=48 * 1024 * 1024),
    )(v_p, d_op)

    # ---- Phase 2: y = x @ W (+ bias), gridded over the batch dimension. -----
    tb = min(batch_tile, _round_up(batch, 8))
    batch_p = _round_up(batch, tb)
    x_p = jnp.pad(x, ((0, batch_p - batch), (0, 0)))
    nb = batch_p // tb

    use_bias = bias is not None
    operands = [x_p, w]
    in_specs = [
        pl.BlockSpec((tb, in_features), lambda i: (i, 0)),
        pl.BlockSpec((in_features, out_p), lambda i: (0, 0)),
    ]
    if use_bias:
        b_p = jnp.pad(bias.astype(jnp.float32).reshape(1, out_features),
                      ((0, 0), (0, out_p - out_features)))
        operands.append(b_p)
        in_specs.append(pl.BlockSpec((1, out_p), lambda i: (0, 0)))

    gemm = functools.partial(_matmul_bias_kernel, use_bias=use_bias,
                             matmul_dtype=matmul_dtype)
    y_p = pl.pallas_call(
        gemm,
        out_shape=jax.ShapeDtypeStruct((batch_p, out_p), jnp.float32),
        grid=(nb,),
        in_specs=in_specs,
        out_specs=pl.BlockSpec((tb, out_p), lambda i: (i, 0)),
        compiler_params=pltpu.CompilerParams(
            dimension_semantics=("parallel",),
            vmem_limit_bytes=48 * 1024 * 1024),
    )(*operands)

    return y_p[:batch, :out_features]


# -----------------------------------------------------------------------------
# Plain-JAX reference (mirror of the PyTorch forward).
# -----------------------------------------------------------------------------
def _reference(x, v, d, bias, in_features, out_features):
    t = v / jnp.linalg.norm(v, axis=1, keepdims=True)
    maxf = v.shape[1]
    u = jnp.eye(maxf, dtype=jnp.float32)
    for i in range(v.shape[0]):                       # u <- u @ H_i
        ti = t[i:i + 1, :]
        u = u - 2.0 * jnp.sum(u * ti, axis=1, keepdims=True) * ti
    if out_features <= in_features:
        w = u[:, :out_features] * d[None, :]
    else:
        w = u[:in_features, :] * d[:, None]
    y = jnp.dot(x, w, precision=lax.Precision.HIGHEST)
    if bias is not None:
        y = y + bias[None, :]
    return y


if __name__ == "__main__":
    key = jax.random.PRNGKey(0)

    def sample_params(key, in_features, out_features, order, use_bias,
                      prior_std=1.0, bias_std=0.01):
        maxf = max(in_features, out_features)
        minf = min(in_features, out_features)
        ks = jax.random.split(key, 10)
        v_mean = prior_std * jax.random.normal(ks[0], (order, maxf), jnp.float32)
        v_logvar = -5.0 + prior_std * jax.random.normal(ks[1], (order, maxf), jnp.float32)
        d_mean = prior_std * jax.random.normal(ks[2], (minf,), jnp.float32)
        d_logvar = -5.0 + prior_std * jax.random.normal(ks[3], (minf,), jnp.float32)
        v = v_mean + jnp.exp(0.5 * v_logvar) * jax.random.normal(ks[6], (order, maxf), jnp.float32)
        d = d_mean + jnp.exp(0.5 * d_logvar) * jax.random.normal(ks[7], (minf,), jnp.float32)
        bias = None
        if use_bias:
            bias_mean = bias_std * jax.random.normal(ks[4], (out_features,), jnp.float32)
            bias_logvar = -5.0 + bias_std * jax.random.normal(ks[5], (out_features,), jnp.float32)
            bias = bias_mean + jnp.exp(0.5 * bias_logvar) * jax.random.normal(
                ks[8], (out_features,), jnp.float32)
        return v, d, bias, ks[9]

    # ---- Config A: out <= in, with bias (32 -> 16, order 8, batch 8). -------
    in_a, out_a, order_a, batch_a = 32, 16, 8, 8
    k_a, k_b = jax.random.split(key)
    v_a, d_a, b_a, kx_a = sample_params(k_a, in_a, out_a, order_a, use_bias=True)
    x_a = jax.random.normal(kx_a, (batch_a, in_a), jnp.float32)

    y_fast = orthogonal_bayesian_dense(x_a, v_a, d_a, b_a, in_features=in_a,
                                       out_features=out_a,
                                       matmul_dtype=jnp.bfloat16)
    y_fast = jax.block_until_ready(y_fast)
    y_exact = orthogonal_bayesian_dense(x_a, v_a, d_a, b_a, in_features=in_a,
                                        out_features=out_a,
                                        matmul_dtype=jnp.float32)
    y_exact = jax.block_until_ready(y_exact)
    y_ref = _reference(x_a, v_a, d_a, b_a, in_a, out_a)

    assert y_fast.shape == (batch_a, out_a)
    assert jnp.allclose(y_exact, y_ref, atol=1e-4, rtol=1e-4), "fp32 path mismatch (A)"
    assert jnp.allclose(y_fast, y_ref, atol=5e-2, rtol=5e-2), "bf16 path mismatch (A)"

    # ---- Config B: out > in, no bias (16 -> 32, order 4, batch 2). ----------
    in_b, out_b, order_b, batch_b = 16, 32, 4, 2
    v_b, d_b, _, kx_b = sample_params(k_b, in_b, out_b, order_b, use_bias=False)
    x_b = jax.random.normal(kx_b, (batch_b, in_b), jnp.float32)

    y_b = orthogonal_bayesian_dense(x_b, v_b, d_b, None, in_features=in_b,
                                    out_features=out_b,
                                    matmul_dtype=jnp.float32)
    y_b = jax.block_until_ready(y_b)
    y_b_ref = _reference(x_b, v_b, d_b, None, in_b, out_b)
    assert y_b.shape == (batch_b, out_b)
    assert jnp.allclose(y_b, y_b_ref, atol=1e-4, rtol=1e-4), "fp32 path mismatch (B)"

    print("KERNEL_OK")
</pallas_src>

<mosaic_0001>
module attributes {stable_mosaic.version = 11 : i64} {
  func.func @_compose_w_kernel(%arg0: memref<8x128xf32, #tpu.memory_space<vmem>>, %arg1: memref<1x128xf32, #tpu.memory_space<vmem>>, %arg2: memref<32x128xf32, #tpu.memory_space<vmem>>) attributes {dimension_semantics = [], scalar_prefetch = 0 : i64, scratch_operands = 0 : i64, tpu.core_type = #tpu.core_type<tc>} {
    %c0 = arith.constant 0 : index
    %c0_0 = arith.constant 0 : index
    %0 = vector.load %arg0[%c0, %c0_0] : memref<8x128xf32, #tpu.memory_space<vmem>>, vector<8x128xf32>
    %1 = arith.mulf %0, %0 : vector<8x128xf32>
    %cst = arith.constant dense<0.000000e+00> : vector<8xf32>
    %2 = vector.multi_reduction <add>, %1, %cst [1] : vector<8x128xf32> to vector<8xf32>
    %3 = vector.shape_cast %2 : vector<8xf32> to vector<8x1xf32>
    %4 = math.rsqrt %3 : vector<8x1xf32>
    %5 = vector.broadcast %4 : vector<8x1xf32> to vector<8x128xf32>
    %6 = arith.mulf %0, %5 : vector<8x128xf32>
    %7 = tpu.iota {dimensions = array<i32: 0>} : vector<128x128xi32>
    %8 = tpu.iota {dimensions = array<i32: 1>} : vector<128x128xi32>
    %c0_i32 = arith.constant 0 : i32
    %9 = vector.broadcast %c0_i32 : i32 to vector<128x128xi32>
    %10 = arith.addi %7, %9 : vector<128x128xi32>
    %11 = arith.cmpi eq, %10, %8 : vector<128x128xi32>
    %12 = arith.extui %11 : vector<128x128xi1> to vector<128x128xi32>
    %13 = arith.sitofp %12 : vector<128x128xi32> to vector<128x128xf32>
    %14 = vector.extract_strided_slice %6 {offsets = [0, 0], sizes = [1, 128], strides = [1, 1]} : vector<8x128xf32> to vector<1x128xf32>
    %15 = vector.broadcast %14 : vector<1x128xf32> to vector<128x128xf32>
    %16 = arith.mulf %13, %15 : vector<128x128xf32>
    %cst_1 = arith.constant dense<0.000000e+00> : vector<128xf32>
    %17 = vector.multi_reduction <add>, %16, %cst_1 [1] : vector<128x128xf32> to vector<128xf32>
    %18 = vector.shape_cast %17 : vector<128xf32> to vector<128x1xf32>
    %cst_2 = arith.constant 2.000000e+00 : f32
    %19 = vector.broadcast %cst_2 : f32 to vector<128x1xf32>
    %20 = arith.mulf %19, %18 : vector<128x1xf32>
    %21 = vector.broadcast %20 : vector<128x1xf32> to vector<128x128xf32>
    %22 = vector.broadcast %14 : vector<1x128xf32> to vector<128x128xf32>
    %23 = arith.mulf %21, %22 : vector<128x128xf32>
    %24 = arith.subf %13, %23 : vector<128x128xf32>
    %25 = vector.extract_strided_slice %6 {offsets = [1, 0], sizes = [1, 128], strides = [1, 1]} : vector<8x128xf32> to vector<1x128xf32>
    %26 = vector.broadcast %25 : vector<1x128xf32> to vector<128x128xf32>
    %27 = arith.mulf %24, %26 : vector<128x128xf32>
    %cst_3 = arith.constant dense<0.000000e+00> : vector<128xf32>
    %28 = vector.multi_reduction <add>, %27, %cst_3 [1] : vector<128x128xf32> to vector<128xf32>
    %29 = vector.shape_cast %28 : vector<128xf32> to vector<128x1xf32>
    %cst_4 = arith.constant 2.000000e+00 : f32
    %30 = vector.broadcast %cst_4 : f32 to vector<128x1xf32>
    %31 = arith.mulf %30, %29 : vector<128x1xf32>
    %32 = vector.broadcast %31 : vector<128x1xf32> to vector<128x128xf32>
    %33 = vector.broadcast %25 : vector<1x128xf32> to vector<128x128xf32>
    %34 = arith.mulf %32, %33 : vector<128x128xf32>
    %35 = arith.subf %24, %34 : vector<128x128xf32>
    %36 = vector.extract_strided_slice %6 {offsets = [2, 0], sizes = [1, 128], strides = [1, 1]} : vector<8x128xf32> to vector<1x128xf32>
    %37 = vector.broadcast %36 : vector<1x128xf32> to vector<128x128xf32>
    %38 = arith.mulf %35, %37 : vector<128x128xf32>
    %cst_5 = arith.constant dense<0.000000e+00> : vector<128xf32>
    %39 = vector.multi_reduction <add>, %38, %cst_5 [1] : vector<128x128xf32> to vector<128xf32>
    %40 = vector.shape_cast %39 : vector<128xf32> to vector<128x1xf32>
    %cst_6 = arith.constant 2.000000e+00 : f32
    %41 = vector.broadcast %cst_6 : f32 to vector<128x1xf32>
    %42 = arith.mulf %41, %40 : vector<128x1xf32>
    %43 = vector.broadcast %42 : vector<128x1xf32> to vector<128x128xf32>
    %44 = vector.broadcast %36 : vector<1x128xf32> to vector<128x128xf32>
    %45 = arith.mulf %43, %44 : vector<128x128xf32>
    %46 = arith.subf %35, %45 : vector<128x128xf32>
    %47 = vector.extract_strided_slice %6 {offsets = [3, 0], sizes = [1, 128], strides = [1, 1]} : vector<8x128xf32> to vector<1x128xf32>
    %48 = vector.broadcast %47 : vector<1x128xf32> to vector<128x128xf32>
    %49 = arith.mulf %46, %48 : vector<128x128xf32>
    %cst_7 = arith.constant dense<0.000000e+00> : vector<128xf32>
    %50 = vector.multi_reduction <add>, %49, %cst_7 [1] : vector<128x128xf32> to vector<128xf32>
    %51 = vector.shape_cast %50 : vector<128xf32> to vector<128x1xf32>
    %cst_8 = arith.constant 2.000000e+00 : f32
    %52 = vector.broadcast %cst_8 : f32 to vector<128x1xf32>
    %53 = arith.mulf %52, %51 : vector<128x1xf32>
    %54 = vector.broadcast %53 : vector<128x1xf32> to vector<128x128xf32>
    %55 = vector.broadcast %47 : vector<1x128xf32> to vector<128x128xf32>
    %56 = arith.mulf %54, %55 : vector<128x128xf32>
    %57 = arith.subf %46, %56 : vector<128x128xf32>
    %58 = vector.extract_strided_slice %6 {offsets = [4, 0], sizes = [1, 128], strides = [1, 1]} : vector<8x128xf32> to vector<1x128xf32>
    %59 = vector.broadcast %58 : vector<1x128xf32> to vector<128x128xf32>
    %60 = arith.mulf %57, %59 : vector<128x128xf32>
    %cst_9 = arith.constant dense<0.000000e+00> : vector<128xf32>
    %61 = vector.multi_reduction <add>, %60, %cst_9 [1] : vector<128x128xf32> to vector<128xf32>
    %62 = vector.shape_cast %61 : vector<128xf32> to vector<128x1xf32>
    %cst_10 = arith.constant 2.000000e+00 : f32
    %63 = vector.broadcast %cst_10 : f32 to vector<128x1xf32>
    %64 = arith.mulf %63, %62 : vector<128x1xf32>
    %65 = vector.broadcast %64 : vector<128x1xf32> to vector<128x128xf32>
    %66 = vector.broadcast %58 : vector<1x128xf32> to vector<128x128xf32>
    %67 = arith.mulf %65, %66 : vector<128x128xf32>
    %68 = arith.subf %57, %67 : vector<128x128xf32>
    %69 = vector.extract_strided_slice %6 {offsets = [5, 0], sizes = [1, 128], strides = [1, 1]} : vector<8x128xf32> to vector<1x128xf32>
    %70 = vector.broadcast %69 : vector<1x128xf32> to vector<128x128xf32>
    %71 = arith.mulf %68, %70 : vector<128x128xf32>
    %cst_11 = arith.constant dense<0.000000e+00> : vector<128xf32>
    %72 = vector.multi_reduction <add>, %71, %cst_11 [1] : vector<128x128xf32> to vector<128xf32>
    %73 = vector.shape_cast %72 : vector<128xf32> to vector<128x1xf32>
    %cst_12 = arith.constant 2.000000e+00 : f32
    %74 = vector.broadcast %cst_12 : f32 to vector<128x1xf32>
    %75 = arith.mulf %74, %73 : vector<128x1xf32>
    %76 = vector.broadcast %75 : vector<128x1xf32> to vector<128x128xf32>
    %77 = vector.broadcast %69 : vector<1x128xf32> to vector<128x128xf32>
    %78 = arith.mulf %76, %77 : vector<128x128xf32>
    %79 = arith.subf %68, %78 : vector<128x128xf32>
    %80 = vector.extract_strided_slice %6 {offsets = [6, 0], sizes = [1, 128], strides = [1, 1]} : vector<8x128xf32> to vector<1x128xf32>
    %81 = vector.broadcast %80 : vector<1x128xf32> to vector<128x128xf32>
    %82 = arith.mulf %79, %81 : vector<128x128xf32>
    %cst_13 = arith.constant dense<0.000000e+00> : vector<128xf32>
    %83 = vector.multi_reduction <add>, %82, %cst_13 [1] : vector<128x128xf32> to vector<128xf32>
    %84 = vector.shape_cast %83 : vector<128xf32> to vector<128x1xf32>
    %cst_14 = arith.constant 2.000000e+00 : f32
    %85 = vector.broadcast %cst_14 : f32 to vector<128x1xf32>
    %86 = arith.mulf %85, %84 : vector<128x1xf32>
    %87 = vector.broadcast %86 : vector<128x1xf32> to vector<128x128xf32>
    %88 = vector.broadcast %80 : vector<1x128xf32> to vector<128x128xf32>
    %89 = arith.mulf %87, %88 : vector<128x128xf32>
    %90 = arith.subf %79, %89 : vector<128x128xf32>
    %91 = vector.extract_strided_slice %6 {offsets = [7, 0], sizes = [1, 128], strides = [1, 1]} : vector<8x128xf32> to vector<1x128xf32>
    %92 = vector.broadcast %91 : vector<1x128xf32> to vector<128x128xf32>
    %93 = arith.mulf %90, %92 : vector<128x128xf32>
    %cst_15 = arith.constant dense<0.000000e+00> : vector<128xf32>
    %94 = vector.multi_reduction <add>, %93, %cst_15 [1] : vector<128x128xf32> to vector<128xf32>
    %95 = vector.shape_cast %94 : vector<128xf32> to vector<128x1xf32>
    %cst_16 = arith.constant 2.000000e+00 : f32
    %96 = vector.broadcast %cst_16 : f32 to vector<128x1xf32>
    %97 = arith.mulf %96, %95 : vector<128x1xf32>
    %98 = vector.broadcast %97 : vector<128x1xf32> to vector<128x128xf32>
    %99 = vector.broadcast %91 : vector<1x128xf32> to vector<128x128xf32>
    %100 = arith.mulf %98, %99 : vector<128x128xf32>
    %101 = arith.subf %90, %100 : vector<128x128xf32>
    %c0_17 = arith.constant 0 : index
    %c0_18 = arith.constant 0 : index
    %102 = vector.load %arg1[%c0_17, %c0_18] : memref<1x128xf32, #tpu.memory_space<vmem>>, vector<1x128xf32>
    %103 = vector.extract_strided_slice %101 {offsets = [0, 0], sizes = [32, 128], strides = [1, 1]} : vector<128x128xf32> to vector<32x128xf32>
    %104 = vector.broadcast %102 : vector<1x128xf32> to vector<32x128xf32>
    %105 = arith.mulf %103, %104 : vector<32x128xf32>
    %c0_19 = arith.constant 0 : index
    %c0_20 = arith.constant 0 : index
    %106 = vector.load %arg2[%c0_19, %c0_20] : memref<32x128xf32, #tpu.memory_space<vmem>>, vector<32x128xf32>
    tpu.vector_store %arg2[%c0_19, %c0_20], %105 {strides = array<i32>} : memref<32x128xf32, #tpu.memory_space<vmem>>, vector<32x128xf32>,
    return
  }
}

</mosaic_0001>

<bundles_post_ra>
// kernel: tpu_custom_call.1
= control target key start
LH: loop header
LB: loop body
LE: loop exit
PB: predicated region body
PF: predicated region fallthrough
CT: control target
= control target key end

     0   :  { %7 = vsyncpa [#allocation3], 0  ;;  %s472_s0 = inlined_call_operand.hbm [shape: f32[8,128], index: 0, kind: input, shape index: {}]   ;;  %s473_s1 = inlined_call_operand.vmem [shape: f32[1,128], index: 1, kind: input, shape index: {}]   ;;  %s474_s2 = inlined_call_operand.hbm [shape: f32[32,128], index: 2, kind: output, shape index: {}]  }
   0x1   :  { %8 = vsyncpa [#allocation4], 0  ;;  %s365_s9 = smov [#allocation2]   ;;  %s317_s13 = scalar_lea.hbm %s472_s0, 128 }
   0x2   :  { %s15_s10 = sshll.u32 %s365_s9, 4  ;;  %p318_p0 = scmp.ne.s32.totalorder %s472_s0, %s317_s13  ;;  %s16_s10 = int_to_ptr.vmem [resolvable:$true] %s15_s10 }
   0x3   :  { %p321_p1 = scmp.lt.u32.totalorder %s317_s13, %s472_s0 }
   0x5   :  { %p323_p2 = pnand %p321_p1, %p318_p0 }
   0x7   :  { %326 = shalt.err (!%p323_p2)
}
   0x8   :  { %s327_s18 = scalar_lea.vmem %s16_s10, 128  ;;  %p332_p4 = scmp.lt.s32.totalorder %s16_s10, %s16_s10 }
   0x9   :  { %p328_p3 = scmp.ne.s32.totalorder %s16_s10, %s327_s18  ;;  %p333_p5 = scmp.lt.s32.totalorder %s327_s18, %s327_s18 }
   0xb   :  { %p334_p6 = por %p333_p5, %p332_p4 }
   0xd   :  { %p335_p7 = pnand %p334_p6, %p328_p3 }
   0xf   :  { %338 = shalt.err (!%p335_p7)
}
  0x10   :  { %18 = dma.hbm_to_vmem [thread:$0]  %s472_s0, 128, %s16_s10, [#allocation3]  }
  0x11   :  { %361 = dma.done.wait [#allocation3], 128  }
  0x12   :  { %362 = vsyncadd [#allocation3], 4294967168  ;;  %v24_v0 = vld [vmem:[#allocation2] sm:$0xff]  ;;  %v30_v2 = vlaneseq  ;;  %v366_v19 = vmov 0.0   ;;  %s367_s22 = smov [#allocation5]  }
  0x13   :  { %v25_v1 = vmul.f32 %v24_v0, %v24_v0  ;;  %s293_s23 = sshll.u32 %s367_s22, 4  ;;  %s294_s23 = int_to_ptr.vmem [resolvable:$true] %s293_s23 }
  0x14   :  { %v31_v4 = vshrl.u32 %v30_v2, 7  ;;  %v36_v6 = vand.u32 127, %v30_v2  ;;  %p344_p9 = scmp.lt.s32.totalorder %s294_s23, %s294_s23 }
  0x15   :  { %26 = vadd.xlane.f32.xlu0 %v25_v1 }
  0x16   :  { %v32_v5 = vadd.s32 8, %v31_v4  ;;  %v51_v7 = vsub.s32 0, %v31_v4  ;;  %v33_v8 = vadd.s32 16, %v31_v4  ;;  %v34_v9 = vadd.s32 24, %v31_v4 }
  0x17   :  { %v79_v10 = vsub.s32 1, %v31_v4  ;;  %vm37_vm1 = vcmp.eq.s32.totalorder %v31_v4, %v36_v6  ;;  %v107_v11 = vsub.s32 2, %v31_v4  ;;  %v135_v12 = vsub.s32 3, %v31_v4 }
  0x18   :  { %vm38_vm0 = vcmp.eq.s32.totalorder %v32_v5, %v36_v6  ;;  %v163_v14 = vsub.s32 4, %v31_v4  ;;  %v191_v15 = vsub.s32 5, %v31_v4  ;;  %v219_v16 = vsub.s32 6, %v31_v4 }
  0x19   :  { %v247_v17 = vsub.s32 7, %v31_v4  ;;  %v306_v20 = vsel %vm38_vm0, 1.0, %v366_v19  ;;  %v305_v21 = vsel %vm37_vm1, 1.0, %v366_v19  ;;  %vm39_vm2 = vcmp.eq.s32.totalorder %v33_v8, %v36_v6 }
  0x1a   :  { %vm40_vm3 = vcmp.eq.s32.totalorder %v34_v9, %v36_v6  ;;  %v307_v32 = vsel %vm39_vm2, 1.0, %v366_v19 }
  0x1b   :  { %v308_v33 = vsel %vm40_vm3, 1.0, %v366_v19 }
  0xa2   :  { %v27_v3 = vpop.xlane.xlu0 %26 }
  0xa3   :  { %315 = vrsqrt.f32 %v27_v3 }
  0xad   :  { %v316_v13 = vpop.eup %315 }
  0xae   :  { %v29_v18 = vmul.f32 %v316_v13, %v24_v0 }
  0xb0   :  { %v52_v22 = vrot.slane %v29_v18, %v51_v7  ;;  %v80_v23 = vrot.slane %v29_v18, %v79_v10  ;;  %v397_v24 = vrot.slane %v29_v18, %v107_v11  ;;  %v399_v25 = vrot.slane %v29_v18, %v135_v12 }
  0xb1   :  { %v401_v26 = vrot.slane %v29_v18, %v163_v14  ;;  %v403_v27 = vrot.slane %v29_v18, %v191_v15  ;;  %v405_v28 = vrot.slane %v29_v18, %v219_v16  ;;  %v407_v29 = vrot.slane %v29_v18, %v247_v17 }
  0xb2   :  { %v54_v30 = vmul.f32 %v306_v20, %v52_v22  ;;  %v53_v31 = vmul.f32 %v305_v21, %v52_v22  ;;  %v55_v34 = vmul.f32 %v307_v32, %v52_v22  ;;  %v56_v35 = vmul.f32 %v308_v33, %v52_v22 }
  0xb4   :  { %59 = vadd.xlane.f32.xlu1 %v54_v30  ;;  %57 = vadd.xlane.f32.xlu0 %v53_v31 }
  0xb8   :  { %61 = vadd.xlane.f32.xlu1 %v55_v34  ;;  %63 = vadd.xlane.f32.xlu0 %v56_v35 }
 0x141   :  { %v60_v36 = vpop.xlane.xlu1 %59  ;;  %v58_v37 = vpop.xlane.xlu0 %57 }
 0x142   :  { %v66_v38 = vmul.f32 2.0, %v60_v36  ;;  %v65_v39 = vmul.f32 2.0, %v58_v37 }
 0x144   :  { %v70_v40 = vmul.f32 %v66_v38, %v52_v22  ;;  %v69_v41 = vmul.f32 %v65_v39, %v52_v22 }
 0x145   :  { %v62_v42 = vpop.xlane.xlu1 %61  ;;  %v64_v43 = vpop.xlane.xlu0 %63 }
 0x146   :  { %v67_v44 = vmul.f32 2.0, %v62_v42  ;;  %v68_v45 = vmul.f32 2.0, %v64_v43  ;;  %v74_v46 = vsub.f32 %v306_v20, %v70_v40  ;;  %v73_v47 = vsub.f32 %v305_v21, %v69_v41 }
 0x148   :  { %v71_v48 = vmul.f32 %v67_v44, %v52_v22  ;;  %v72_v49 = vmul.f32 %v68_v45, %v52_v22  ;;  %v82_v50 = vmul.f32 %v80_v23, %v74_v46  ;;  %v81_v51 = vmul.f32 %v80_v23, %v73_v47 }
 0x14a   :  { %87 = vadd.xlane.f32.xlu0 %v82_v50  ;;  %85 = vadd.xlane.f32.xlu1 %v81_v51  ;;  %v75_v52 = vsub.f32 %v307_v32, %v71_v48  ;;  %v76_v53 = vsub.f32 %v308_v33, %v72_v49 }
 0x14c   :  { %v83_v54 = vmul.f32 %v80_v23, %v75_v52  ;;  %v84_v55 = vmul.f32 %v80_v23, %v76_v53 }
 0x14e   :  { %89 = vadd.xlane.f32.xlu1 %v83_v54  ;;  %91 = vadd.xlane.f32.xlu0 %v84_v55 }
 0x1d7   :  { %v86_v56 = vpop.xlane.xlu1 %85  ;;  %v88_v57 = vpop.xlane.xlu0 %87 }
 0x1d8   :  { %v93_v58 = vmul.f32 2.0, %v86_v56  ;;  %v94_v59 = vmul.f32 2.0, %v88_v57 }
 0x1da   :  { %v97_v60 = vmul.f32 %v93_v58, %v80_v23  ;;  %v98_v61 = vmul.f32 %v94_v59, %v80_v23 }
 0x1db   :  { %v90_v62 = vpop.xlane.xlu1 %89  ;;  %v92_v63 = vpop.xlane.xlu0 %91 }
 0x1dc   :  { %v95_v0 = vmul.f32 2.0, %v90_v62  ;;  %v96_v1 = vmul.f32 2.0, %v92_v63  ;;  %v101_v2 = vsub.f32 %v73_v47, %v97_v60  ;;  %v102_v3 = vsub.f32 %v74_v46, %v98_v61 }
 0x1de   :  { %v99_v4 = vmul.f32 %v95_v0, %v80_v23  ;;  %v100_v5 = vmul.f32 %v96_v1, %v80_v23  ;;  %v109_v6 = vmul.f32 %v397_v24, %v101_v2  ;;  %v110_v7 = vmul.f32 %v397_v24, %v102_v3 }
 0x1e0   :  { %113 = vadd.xlane.f32.xlu1 %v109_v6  ;;  %115 = vadd.xlane.f32.xlu0 %v110_v7  ;;  %v103_v8 = vsub.f32 %v75_v52, %v99_v4  ;;  %v104_v9 = vsub.f32 %v76_v53, %v100_v5 }
 0x1e2   :  { %v111_v10 = vmul.f32 %v397_v24, %v103_v8  ;;  %v112_v11 = vmul.f32 %v397_v24, %v104_v9 }
 0x1e4   :  { %117 = vadd.xlane.f32.xlu1 %v111_v10  ;;  %119 = vadd.xlane.f32.xlu0 %v112_v11 }
 0x26d   :  { %v114_v12 = vpop.xlane.xlu1 %113  ;;  %v116_v13 = vpop.xlane.xlu0 %115 }
 0x26e   :  { %v121_v14 = vmul.f32 2.0, %v114_v12  ;;  %v122_v15 = vmul.f32 2.0, %v116_v13 }
 0x270   :  { %v125_v16 = vmul.f32 %v121_v14, %v397_v24  ;;  %v126_v17 = vmul.f32 %v122_v15, %v397_v24 }
 0x271   :  { %v118_v18 = vpop.xlane.xlu1 %117  ;;  %v120_v19 = vpop.xlane.xlu0 %119 }
 0x272   :  { %v123_v20 = vmul.f32 2.0, %v118_v18  ;;  %v124_v21 = vmul.f32 2.0, %v120_v19  ;;  %v129_v22 = vsub.f32 %v101_v2, %v125_v16  ;;  %v130_v23 = vsub.f32 %v102_v3, %v126_v17 }
 0x274   :  { %v127_v30 = vmul.f32 %v123_v20, %v397_v24  ;;  %v128_v31 = vmul.f32 %v124_v21, %v397_v24  ;;  %v137_v32 = vmul.f32 %v399_v25, %v129_v22  ;;  %v138_v33 = vmul.f32 %v399_v25, %v130_v23 }
 0x276   :  { %141 = vadd.xlane.f32.xlu1 %v137_v32  ;;  %143 = vadd.xlane.f32.xlu0 %v138_v33  ;;  %v131_v34 = vsub.f32 %v103_v8, %v127_v30  ;;  %v132_v35 = vsub.f32 %v104_v9, %v128_v31 }
 0x278   :  { %v139_v36 = vmul.f32 %v399_v25, %v131_v34  ;;  %v140_v37 = vmul.f32 %v399_v25, %v132_v35 }
 0x27a   :  { %145 = vadd.xlane.f32.xlu1 %v139_v36  ;;  %147 = vadd.xlane.f32.xlu0 %v140_v37 }
 0x303   :  { %v142_v38 = vpop.xlane.xlu1 %141  ;;  %v144_v39 = vpop.xlane.xlu0 %143 }
 0x304   :  { %v149_v40 = vmul.f32 2.0, %v142_v38  ;;  %v150_v41 = vmul.f32 2.0, %v144_v39 }
 0x306   :  { %v153_v24 = vmul.f32 %v149_v40, %v399_v25  ;;  %v154_v42 = vmul.f32 %v150_v41, %v399_v25 }
 0x307   :  { %v146_v43 = vpop.xlane.xlu1 %145  ;;  %v148_v44 = vpop.xlane.xlu0 %147 }
 0x308   :  { %v151_v45 = vmul.f32 2.0, %v146_v43  ;;  %v152_v46 = vmul.f32 2.0, %v148_v44  ;;  %v157_v47 = vsub.f32 %v129_v22, %v153_v24  ;;  %v158_v48 = vsub.f32 %v130_v23, %v154_v42 }
 0x30a   :  { %v155_v49 = vmul.f32 %v151_v45, %v399_v25  ;;  %v156_v50 = vmul.f32 %v152_v46, %v399_v25  ;;  %v165_v51 = vmul.f32 %v401_v26, %v157_v47  ;;  %v166_v52 = vmul.f32 %v401_v26, %v158_v48 }
 0x30c   :  { %169 = vadd.xlane.f32.xlu1 %v165_v51  ;;  %171 = vadd.xlane.f32.xlu0 %v166_v52  ;;  %v159_v53 = vsub.f32 %v131_v34, %v155_v49  ;;  %v160_v54 = vsub.f32 %v132_v35, %v156_v50 }
 0x30e   :  { %v167_v55 = vmul.f32 %v401_v26, %v159_v53  ;;  %v168_v56 = vmul.f32 %v401_v26, %v160_v54 }
 0x310   :  { %173 = vadd.xlane.f32.xlu1 %v167_v55  ;;  %175 = vadd.xlane.f32.xlu0 %v168_v56 }
 0x399   :  { %v170_v57 = vpop.xlane.xlu1 %169  ;;  %v172_v58 = vpop.xlane.xlu0 %171 }
 0x39a   :  { %v177_v59 = vmul.f32 2.0, %v170_v57  ;;  %v178_v60 = vmul.f32 2.0, %v172_v58 }
 0x39c   :  { %v181_v25 = vmul.f32 %v177_v59, %v401_v26  ;;  %v182_v61 = vmul.f32 %v178_v60, %v401_v26  ;;  %v309_v60 = vld [vmem:[%s473_s1] ss:$0 sm:$0xff]  ;;  %s339_s1 = scalar_lea.vmem %s294_s23, 512 }
 0x39d   :  { %v174_v62 = vpop.xlane.xlu1 %173  ;;  %v176_v63 = vpop.xlane.xlu0 %175  ;;  %p340_p8 = scmp.ne.s32.totalorder %s294_s23, %s339_s1  ;;  %p345_p10 = scmp.lt.s32.totalorder %s339_s1, %s339_s1 }
 0x39e   :  { %v179_v0 = vmul.f32 2.0, %v174_v62  ;;  %v180_v1 = vmul.f32 2.0, %v176_v63  ;;  %v185_v2 = vsub.f32 %v157_v47, %v181_v25  ;;  %v186_v3 = vsub.f32 %v158_v48, %v182_v61 }
 0x39f   :  { %p346_p11 = por %p345_p10, %p344_p9 }
 0x3a0   :  { %v183_v4 = vmul.f32 %v179_v0, %v401_v26  ;;  %v184_v5 = vmul.f32 %v180_v1, %v401_v26  ;;  %v193_v6 = vmul.f32 %v403_v27, %v185_v2  ;;  %v194_v7 = vmul.f32 %v403_v27, %v186_v3 }
 0x3a1   :  { %p347_p12 = pnand %p346_p11, %p340_p8 }
 0x3a2   :  { %197 = vadd.xlane.f32.xlu1 %v193_v6  ;;  %199 = vadd.xlane.f32.xlu0 %v194_v7  ;;  %v187_v8 = vsub.f32 %v159_v53, %v183_v4  ;;  %v188_v9 = vsub.f32 %v160_v54, %v184_v5 }
 0x3a4   :  { %v195_v10 = vmul.f32 %v403_v27, %v187_v8  ;;  %v196_v11 = vmul.f32 %v403_v27, %v188_v9 }
 0x3a6   :  { %201 = vadd.xlane.f32.xlu1 %v195_v10  ;;  %203 = vadd.xlane.f32.xlu0 %v196_v11 }
 0x42f   :  { %v198_v12 = vpop.xlane.xlu1 %197  ;;  %v200_v13 = vpop.xlane.xlu0 %199 }
 0x430   :  { %v205_v14 = vmul.f32 2.0, %v198_v12  ;;  %v206_v15 = vmul.f32 2.0, %v200_v13 }
 0x432   :  { %v209_v26 = vmul.f32 %v205_v14, %v403_v27  ;;  %v210_v16 = vmul.f32 %v206_v15, %v403_v27 }
 0x433   :  { %v202_v17 = vpop.xlane.xlu1 %201  ;;  %v204_v18 = vpop.xlane.xlu0 %203 }
 0x434   :  { %v207_v19 = vmul.f32 2.0, %v202_v17  ;;  %v208_v20 = vmul.f32 2.0, %v204_v18  ;;  %v213_v21 = vsub.f32 %v185_v2, %v209_v26  ;;  %v214_v22 = vsub.f32 %v186_v3, %v210_v16 }
 0x436   :  { %v211_v23 = vmul.f32 %v207_v19, %v403_v27  ;;  %v212_v30 = vmul.f32 %v208_v20, %v403_v27  ;;  %v221_v31 = vmul.f32 %v405_v28, %v213_v21  ;;  %v222_v32 = vmul.f32 %v405_v28, %v214_v22 }
 0x438   :  { %225 = vadd.xlane.f32.xlu1 %v221_v31  ;;  %227 = vadd.xlane.f32.xlu0 %v222_v32  ;;  %v215_v33 = vsub.f32 %v187_v8, %v211_v23  ;;  %v216_v34 = vsub.f32 %v188_v9, %v212_v30 }
 0x43a   :  { %v223_v35 = vmul.f32 %v405_v28, %v215_v33  ;;  %v224_v36 = vmul.f32 %v405_v28, %v216_v34 }
 0x43c   :  { %229 = vadd.xlane.f32.xlu1 %v223_v35  ;;  %231 = vadd.xlane.f32.xlu0 %v224_v36 }
 0x4c5   :  { %v226_v37 = vpop.xlane.xlu1 %225  ;;  %v228_v38 = vpop.xlane.xlu0 %227 }
 0x4c6   :  { %v233_v39 = vmul.f32 2.0, %v226_v37  ;;  %v234_v40 = vmul.f32 2.0, %v228_v38 }
 0x4c8   :  { %v237_v27 = vmul.f32 %v233_v39, %v405_v28  ;;  %v238_v41 = vmul.f32 %v234_v40, %v405_v28 }
 0x4c9   :  { %v230_v24 = vpop.xlane.xlu1 %229  ;;  %v232_v42 = vpop.xlane.xlu0 %231 }
 0x4ca   :  { %v235_v43 = vmul.f32 2.0, %v230_v24  ;;  %v236_v44 = vmul.f32 2.0, %v232_v42  ;;  %v241_v45 = vsub.f32 %v213_v21, %v237_v27  ;;  %v242_v46 = vsub.f32 %v214_v22, %v238_v41 }
 0x4cc   :  { %v239_v47 = vmul.f32 %v235_v43, %v405_v28  ;;  %v240_v48 = vmul.f32 %v236_v44, %v405_v28  ;;  %v249_v49 = vmul.f32 %v407_v29, %v241_v45  ;;  %v250_v50 = vmul.f32 %v407_v29, %v242_v46 }
 0x4ce   :  { %253 = vadd.xlane.f32.xlu1 %v249_v49  ;;  %255 = vadd.xlane.f32.xlu0 %v250_v50  ;;  %v243_v51 = vsub.f32 %v215_v33, %v239_v47  ;;  %v244_v52 = vsub.f32 %v216_v34, %v240_v48 }
 0x4d0   :  { %v251_v53 = vmul.f32 %v407_v29, %v243_v51  ;;  %v252_v54 = vmul.f32 %v407_v29, %v244_v52 }
 0x4d2   :  { %257 = vadd.xlane.f32.xlu1 %v251_v53  ;;  %259 = vadd.xlane.f32.xlu0 %v252_v54 }
 0x55b   :  { %v254_v55 = vpop.xlane.xlu1 %253  ;;  %v256_v56 = vpop.xlane.xlu0 %255 }
 0x55c   :  { %v261_v57 = vmul.f32 2.0, %v254_v55  ;;  %v262_v58 = vmul.f32 2.0, %v256_v56 }
 0x55e   :  { %v265_v28 = vmul.f32 %v261_v57, %v407_v29  ;;  %v266_v59 = vmul.f32 %v262_v58, %v407_v29 }
 0x55f   :  { %v258_v25 = vpop.xlane.xlu1 %257  ;;  %v260_v61 = vpop.xlane.xlu0 %259 }
 0x560   :  { %v269_v62 = vsub.f32 %v241_v45, %v265_v28  ;;  %v270_v63 = vsub.f32 %v242_v46, %v266_v59  ;;  %v263_v0 = vmul.f32 2.0, %v258_v25  ;;  %v264_v1 = vmul.f32 2.0, %v260_v61 }
 0x562   :  { %v280_v2 = vmul.f32 %v309_v60, %v269_v62  ;;  %v281_v3 = vmul.f32 %v309_v60, %v270_v63  ;;  %v267_v4 = vmul.f32 %v263_v0, %v407_v29  ;;  %v268_v5 = vmul.f32 %v264_v1, %v407_v29 }
 0x564   :  { %284 = vst [vmem:[#allocation5] sm:$0xff] %v280_v2  ;;  %285 = vst [vmem:[#allocation5 + $0x8] sm:$0xff] %v281_v3  ;;  %v271_v6 = vsub.f32 %v243_v51, %v267_v4  ;;  %v272_v7 = vsub.f32 %v244_v52, %v268_v5 }
 0x566   :  { %v282_v8 = vmul.f32 %v309_v60, %v271_v6  ;;  %v283_v9 = vmul.f32 %v309_v60, %v272_v7 }
 0x568   :  { %286 = vst [vmem:[#allocation5 + $0x10] sm:$0xff] %v282_v8  ;;  %287 = vst [vmem:[#allocation5 + $0x18] sm:$0xff] %v283_v9 }
 0x569   :  { %350 = shalt.err (!%p347_p12)
}
 0x56a   :  { %s351_s26 = scalar_lea.hbm %s474_s2, 512 }
 0x56b   :  { %p352_p13 = scmp.ne.s32.totalorder %s474_s2, %s351_s26  ;;  %p355_p0 = scmp.lt.u32.totalorder %s351_s26, %s474_s2 }
 0x56d   :  { %p357_p1 = pnand %p355_p0, %p352_p13 }
 0x56f   :  { %360 = shalt.err (!%p357_p1)
}
 0x570   :  { %s368_s3 = smov 128   ;;  %s369_s4 = smov 8  }
 0x571   :  { %299 = dma.vmem_to_hbm [thread:$0]  %s294_s23, 512, %s474_s2, [#allocation4], %s368_s3, %s368_s3, %s369_s4  }
 0x572   :  { %363 = dma.done.wait [#allocation4], 512  }
 0x573   :  { %364 = vsyncadd [#allocation4], 4294966784 }
 0x574   :  { %303 = vsyncpa [#allocation3], 1 }
 0x575   :  { %304 = vsyncpa [#allocation4], 1 }

</bundles_post_ra>
